<compile_context>
chip_gen: v7x
topology: tpu7x:2x2x1
jax: 0.10.0
libtpu: 0.0.40
codegen_flags: <defaults>
</compile_context>

<pallas_src>
import functools

import jax
import jax.numpy as jnp
from jax.experimental import pallas as pl
from jax.experimental.pallas import tpu as pltpu

PAD = 128  # lane-dense width for HIDDEN features only (in/out stay narrow in HBM)


def _round_up(x, m):
    return ((x + m - 1) // m) * m


def _pick_row_tile(n_rows, cap=1024):
    """Row tile ~ ceil(N/k): large tiles (amortize ~0.35us/step overhead), multiple
    of 8 sublanes, no mostly-padded ragged tail, and >= 2 blocks once N >= cap so the
    parallel grid axis can shard across both v7x TensorCores."""
    n = max(int(n_rows), 8)
    k = -(-n // cap)
    if n >= cap:
        k = max(k, 2)
    return _round_up(-(-n // k), 8)


def _mlp_fused_kernel(*refs, layer_cfgs, eps, matmul_dtype):
    """refs = (x_ref, w_ref_0..w_ref_{L-1}, vec_ref, o_ref).

    layer_cfgs: static tuple of (do_norm, do_relu, real_out_features) per layer.
    Hidden features are zero-padded to PAD lanes; padded lanes carry exact zeros
    through every stage (zero W cols, zero bias/gamma/beta pads), so LayerNorm
    statistics computed from plain lane sums / real_out_features are exact.
    """
    x_ref = refs[0]
    o_ref = refs[-1]
    vec_ref = refs[-2]
    w_refs = refs[1:-2]

    h = x_ref[...].astype(jnp.float32)
    row = 0
    for li, (do_norm, do_relu, m_real) in enumerate(layer_cfgs):
        w = w_refs[li][...]
        # MXU matmul; operands optionally bf16 (v5e/v6e), accumulation always f32.
        y = jnp.dot(h.astype(matmul_dtype), w.astype(matmul_dtype),
                    preferred_element_type=jnp.float32)
        yw = y.shape[-1]
        b = vec_ref[row:row + 1, :]          # (1, PAD) f32
        row += 1
        y = y + b[:, :yw]
        if do_norm:
            g = vec_ref[row:row + 1, :][:, :yw]
            be = vec_ref[row + 1:row + 2, :][:, :yw]
            row += 2
            inv_m = 1.0 / float(m_real)
            # Pad lanes of y are exactly 0, so plain lane sums already restrict to
            # the real features; E[x^2]-E[x]^2 avoids the mask + extra VPU pass.
            mean = jnp.sum(y, axis=-1, keepdims=True) * inv_m
            ex2 = jnp.sum(y * y, axis=-1, keepdims=True) * inv_m
            var = jnp.maximum(ex2 - mean * mean, 0.0)
            # rsqrt runs on the EUP slot -> effectively free in the fused kernel.
            y = (y - mean) * jax.lax.rsqrt(var + eps) * g + be  # pad lanes -> 0
        if do_relu:
            y = jnp.maximum(y, 0.0)
        h = y
    o_ref[...] = h.astype(o_ref.dtype)


def mlp_forward_fused(x, params, *, eps=1e-5, matmul_dtype=jnp.float32,
                      row_tile=None):
    """Fused forward for the whole MLP. x: (N, in_c) f32. Returns (N, out_c)."""
    N, c_in = x.shape
    num_layers = len(params)
    out_c = params[-1]['w'].shape[1]

    TN = int(row_tile) if row_tile is not None else _pick_row_tile(N)
    TN = max(8, _round_up(TN, 8))
    N_pad = _round_up(max(N, 8), TN)

    # Only pad ROWS (if needed); feature width stays the real c_in.
    x_in = x
    if N_pad != N:
        x_in = jnp.zeros((N_pad, c_in), x.dtype).at[:N, :].set(x)

    w_dtype = jnp.dtype(matmul_dtype)

    flat_inputs = [x_in]
    in_specs = [pl.BlockSpec((TN, c_in), lambda i: (i, 0))]

    vec_rows = []
    layer_cfgs = []
    flops = 0
    transcendentals = 0
    for li, p in enumerate(params):
        cin, cout = p['w'].shape
        cin_p = c_in if li == 0 else PAD            # first layer: narrow input dim
        cout_p = out_c if li == num_layers - 1 else PAD  # last layer: narrow output
        w_p = jnp.zeros((cin_p, cout_p), w_dtype).at[:cin, :cout].set(
            p['w'].astype(w_dtype))
        flat_inputs.append(w_p)
        in_specs.append(pl.BlockSpec((cin_p, cout_p), lambda i: (0, 0)))

        vec_rows.append(jnp.zeros((PAD,), jnp.float32).at[:cout].set(
            p['b'].reshape(-1)))
        if p['do_norm']:
            # gamma/beta padded with ZEROS so padded hidden lanes stay exactly 0.
            vec_rows.append(jnp.zeros((PAD,), jnp.float32).at[:cout].set(
                p['gamma'].reshape(-1)))
            vec_rows.append(jnp.zeros((PAD,), jnp.float32).at[:cout].set(
                p['beta'].reshape(-1)))
            transcendentals += N_pad
        layer_cfgs.append((bool(p['do_norm']), bool(p['do_relu']), int(cout)))
        flops += 2 * N_pad * cin_p * cout_p

    vecs = jnp.stack(vec_rows, axis=0)              # (K, 128) f32, single DMA
    flat_inputs.append(vecs)
    in_specs.append(pl.BlockSpec(vecs.shape, lambda i: (0, 0)))

    bytes_accessed = sum(int(a.size) * a.dtype.itemsize for a in flat_inputs)
    bytes_accessed += N_pad * out_c * jnp.dtype(x.dtype).itemsize
    cost = pl.CostEstimate(flops=flops, transcendentals=transcendentals,
                           bytes_accessed=bytes_accessed)

    kernel = functools.partial(_mlp_fused_kernel, layer_cfgs=tuple(layer_cfgs),
                               eps=eps, matmul_dtype=w_dtype)

    out = pl.pallas_call(
        kernel,
        out_shape=jax.ShapeDtypeStruct((N_pad, out_c), x.dtype),
        grid=(N_pad // TN,),
        in_specs=in_specs,
        out_specs=pl.BlockSpec((TN, out_c), lambda i: (i, 0)),
        compiler_params=pltpu.CompilerParams(
            dimension_semantics=("parallel",)),
        cost_estimate=cost,
    )(*flat_inputs)

    return out[:N] if N_pad != N else out


def init_mlp_params(key, in_channel, hidden_channel, out_channel, num_layers,
                    norm_mode, act_final):
    """Deterministic parameter init mirroring the PyTorch module structure.

    Linear weights are stored transposed vs. PyTorch, i.e. (in, out), so the
    kernel computes y = x @ W + b directly on the MXU.
    """
    params = []
    for i in range(num_layers):
        if num_layers == 1:
            cin, cout = in_channel, out_channel
        elif i == 0:
            cin, cout = in_channel, hidden_channel
        elif i == num_layers - 1:
            cin, cout = hidden_channel, out_channel
        else:
            cin, cout = hidden_channel, hidden_channel

        key, kw, kb = jax.random.split(key, 3)
        # PyTorch Linear default init: U(-1/sqrt(in), 1/sqrt(in)).
        bound = 1.0 / (cin ** 0.5)
        w = jax.random.uniform(kw, (cin, cout), jnp.float32, -bound, bound)
        b = jax.random.uniform(kb, (1, cout), jnp.float32, -bound, bound)

        has_tail = (i < num_layers - 1) or (act_final is True)
        do_norm = has_tail and (norm_mode == 'insert')
        do_relu = has_tail
        gamma = jnp.ones((1, cout), jnp.float32)    # LayerNorm defaults
        beta = jnp.zeros((1, cout), jnp.float32)

        params.append(dict(w=w, b=b, gamma=gamma, beta=beta,
                           do_norm=do_norm, do_relu=do_relu))
    return params


def _reference(x, params, eps=1e-5):
    r = x
    for p in params:
        r = r @ p['w'] + p['b']
        if p['do_norm']:
            m = jnp.mean(r, axis=-1, keepdims=True)
            v = jnp.mean((r - m) ** 2, axis=-1, keepdims=True)
            r = (r - m) / jnp.sqrt(v + eps) * p['gamma'] + p['beta']
        if p['do_relu']:
            r = jnp.maximum(r, 0.0)
    return r


if __name__ == "__main__":
    # Small, module-consistent shapes.
    N = 8
    IN_C, HID_C, OUT_C = 16, 32, 16
    NUM_LAYERS = 3
    NORM_MODE = 'insert'
    ACT_FINAL = False

    key = jax.random.PRNGKey(0)
    key, kx = jax.random.split(key)
    x = jax.random.normal(kx, (N, IN_C), jnp.float32)
    params = init_mlp_params(key, IN_C, HID_C, OUT_C, NUM_LAYERS,
                             NORM_MODE, ACT_FINAL)

    # 1) Default f32 path at the module's small shape (single row block).
    out = jax.block_until_ready(mlp_forward_fused(x, params))
    assert out.shape == (N, OUT_C), out.shape
    ref = _reference(x, params)
    err = float(jnp.max(jnp.abs(out - ref)))
    assert jnp.allclose(out, ref, atol=5e-4, rtol=5e-4), err

    # 2) Multi-block grid + ragged row tail (exercises tiling and row padding).
    key, kx2 = jax.random.split(key)
    x2 = jax.random.normal(kx2, (200, IN_C), jnp.float32)
    out2 = jax.block_until_ready(mlp_forward_fused(x2, params, row_tile=64))
    ref2 = _reference(x2, params)
    err2 = float(jnp.max(jnp.abs(out2 - ref2)))
    assert out2.shape == (200, OUT_C), out2.shape
    assert jnp.allclose(out2, ref2, atol=5e-4, rtol=5e-4), err2

    # 3) bf16 matmul-operand option (v5e/v6e throughput), f32 accumulation.
    out3 = jax.block_until_ready(
        mlp_forward_fused(x2, params, matmul_dtype=jnp.bfloat16, row_tile=64))
    err3 = float(jnp.max(jnp.abs(out3 - ref2)))
    assert jnp.allclose(out3, ref2, atol=5e-2, rtol=5e-2), err3

    print("KERNEL_OK")
</pallas_src>

<mosaic_0001>
module attributes {stable_mosaic.version = 11 : i64} {
  func.func @_mlp_fused_kernel(%arg0: i32, %arg1: memref<8x16xf32, #tpu.memory_space<vmem>>, %arg2: memref<16x128xf32, #tpu.memory_space<vmem>>, %arg3: memref<128x128xf32, #tpu.memory_space<vmem>>, %arg4: memref<128x16xf32, #tpu.memory_space<vmem>>, %arg5: memref<7x128xf32, #tpu.memory_space<vmem>>, %arg6: memref<8x16xf32, #tpu.memory_space<vmem>>) attributes {dimension_semantics = [#tpu.dimension_semantics<parallel>], iteration_bounds = array<i64: 1>, scalar_prefetch = 0 : i64, scratch_operands = 0 : i64, tpu.core_type = #tpu.core_type<tc>, window_params = [{transform_indices = @transform_0, window_bounds = array<i64: 8, 16>}, {pipeline_mode = #tpu.pipeline_mode<synchronous>, transform_indices = @transform_1, window_bounds = array<i64: 16, 128>}, {pipeline_mode = #tpu.pipeline_mode<synchronous>, transform_indices = @transform_2, window_bounds = array<i64: 128, 128>}, {pipeline_mode = #tpu.pipeline_mode<synchronous>, transform_indices = @transform_3, window_bounds = array<i64: 128, 16>}, {pipeline_mode = #tpu.pipeline_mode<synchronous>, transform_indices = @transform_4, window_bounds = array<i64: 7, 128>}, {transform_indices = @transform_5, window_bounds = array<i64: 8, 16>}]} {
    %c0 = arith.constant 0 : index
    %c0_0 = arith.constant 0 : index
    %0 = vector.load %arg1[%c0, %c0_0] : memref<8x16xf32, #tpu.memory_space<vmem>>, vector<8x16xf32>
    %c0_1 = arith.constant 0 : index
    %c0_2 = arith.constant 0 : index
    %1 = vector.load %arg2[%c0_1, %c0_2] : memref<16x128xf32, #tpu.memory_space<vmem>>, vector<16x128xf32>
    %cst = arith.constant dense<0.000000e+00> : vector<8x128xf32>
    %2 = tpu.matmul %0, %1, %cst {dimension_numbers = #tpu.dot_dimension_numbers<[1], [0], [0], [1], [0, 0, 1, 1], [], []>} : vector<8x16xf32>, vector<16x128xf32>, vector<8x128xf32> -> vector<8x128xf32>
    %c0_3 = arith.constant 0 : index
    %c0_4 = arith.constant 0 : index
    %3 = vector.load %arg5[%c0_3, %c0_4] : memref<7x128xf32, #tpu.memory_space<vmem>>, vector<1x128xf32>
    %4 = vector.broadcast %3 : vector<1x128xf32> to vector<8x128xf32>
    %5 = arith.addf %2, %4 : vector<8x128xf32>
    %c1 = arith.constant 1 : index
    %c0_5 = arith.constant 0 : index
    %6 = vector.load %arg5[%c1, %c0_5] : memref<7x128xf32, #tpu.memory_space<vmem>>, vector<1x128xf32>
    %c2 = arith.constant 2 : index
    %c0_6 = arith.constant 0 : index
    %7 = vector.load %arg5[%c2, %c0_6] : memref<7x128xf32, #tpu.memory_space<vmem>>, vector<1x128xf32>
    %cst_7 = arith.constant dense<0.000000e+00> : vector<8xf32>
    %8 = vector.multi_reduction <add>, %5, %cst_7 [1] : vector<8x128xf32> to vector<8xf32>
    %9 = vector.shape_cast %8 : vector<8xf32> to vector<8x1xf32>
    %cst_8 = arith.constant 3.125000e-02 : f32
    %10 = vector.broadcast %cst_8 : f32 to vector<8x1xf32>
    %11 = arith.mulf %9, %10 : vector<8x1xf32>
    %12 = arith.mulf %5, %5 : vector<8x128xf32>
    %cst_9 = arith.constant dense<0.000000e+00> : vector<8xf32>
    %13 = vector.multi_reduction <add>, %12, %cst_9 [1] : vector<8x128xf32> to vector<8xf32>
    %14 = vector.shape_cast %13 : vector<8xf32> to vector<8x1xf32>
    %cst_10 = arith.constant 3.125000e-02 : f32
    %15 = vector.broadcast %cst_10 : f32 to vector<8x1xf32>
    %16 = arith.mulf %14, %15 : vector<8x1xf32>
    %17 = arith.mulf %11, %11 : vector<8x1xf32>
    %18 = arith.subf %16, %17 : vector<8x1xf32>
    %cst_11 = arith.constant 0.000000e+00 : f32
    %19 = vector.broadcast %cst_11 : f32 to vector<8x1xf32>
    %20 = arith.maximumf %18, %19 : vector<8x1xf32>
    %21 = vector.broadcast %11 : vector<8x1xf32> to vector<8x128xf32>
    %22 = arith.subf %5, %21 : vector<8x128xf32>
    %cst_12 = arith.constant 9.99999974E-6 : f32
    %23 = vector.broadcast %cst_12 : f32 to vector<8x1xf32>
    %24 = arith.addf %20, %23 : vector<8x1xf32>
    %25 = math.rsqrt %24 : vector<8x1xf32>
    %26 = vector.broadcast %25 : vector<8x1xf32> to vector<8x128xf32>
    %27 = arith.mulf %22, %26 : vector<8x128xf32>
    %28 = vector.broadcast %6 : vector<1x128xf32> to vector<8x128xf32>
    %29 = arith.mulf %27, %28 : vector<8x128xf32>
    %30 = vector.broadcast %7 : vector<1x128xf32> to vector<8x128xf32>
    %31 = arith.addf %29, %30 : vector<8x128xf32>
    %cst_13 = arith.constant 0.000000e+00 : f32
    %32 = vector.broadcast %cst_13 : f32 to vector<8x128xf32>
    %33 = arith.maximumf %31, %32 : vector<8x128xf32>
    %c0_14 = arith.constant 0 : index
    %c0_15 = arith.constant 0 : index
    %34 = vector.load %arg3[%c0_14, %c0_15] : memref<128x128xf32, #tpu.memory_space<vmem>>, vector<128x128xf32>
    %cst_16 = arith.constant dense<0.000000e+00> : vector<8x128xf32>
    %35 = tpu.matmul %33, %34, %cst_16 {dimension_numbers = #tpu.dot_dimension_numbers<[1], [0], [0], [1], [0, 0, 1, 1], [], []>} : vector<8x128xf32>, vector<128x128xf32>, vector<8x128xf32> -> vector<8x128xf32>
    %c3 = arith.constant 3 : index
    %c0_17 = arith.constant 0 : index
    %36 = vector.load %arg5[%c3, %c0_17] : memref<7x128xf32, #tpu.memory_space<vmem>>, vector<1x128xf32>
    %37 = vector.broadcast %36 : vector<1x128xf32> to vector<8x128xf32>
    %38 = arith.addf %35, %37 : vector<8x128xf32>
    %c4 = arith.constant 4 : index
    %c0_18 = arith.constant 0 : index
    %39 = vector.load %arg5[%c4, %c0_18] : memref<7x128xf32, #tpu.memory_space<vmem>>, vector<1x128xf32>
    %c5 = arith.constant 5 : index
    %c0_19 = arith.constant 0 : index
    %40 = vector.load %arg5[%c5, %c0_19] : memref<7x128xf32, #tpu.memory_space<vmem>>, vector<1x128xf32>
    %cst_20 = arith.constant dense<0.000000e+00> : vector<8xf32>
    %41 = vector.multi_reduction <add>, %38, %cst_20 [1] : vector<8x128xf32> to vector<8xf32>
    %42 = vector.shape_cast %41 : vector<8xf32> to vector<8x1xf32>
    %cst_21 = arith.constant 3.125000e-02 : f32
    %43 = vector.broadcast %cst_21 : f32 to vector<8x1xf32>
    %44 = arith.mulf %42, %43 : vector<8x1xf32>
    %45 = arith.mulf %38, %38 : vector<8x128xf32>
    %cst_22 = arith.constant dense<0.000000e+00> : vector<8xf32>
    %46 = vector.multi_reduction <add>, %45, %cst_22 [1] : vector<8x128xf32> to vector<8xf32>
    %47 = vector.shape_cast %46 : vector<8xf32> to vector<8x1xf32>
    %cst_23 = arith.constant 3.125000e-02 : f32
    %48 = vector.broadcast %cst_23 : f32 to vector<8x1xf32>
    %49 = arith.mulf %47, %48 : vector<8x1xf32>
    %50 = arith.mulf %44, %44 : vector<8x1xf32>
    %51 = arith.subf %49, %50 : vector<8x1xf32>
    %cst_24 = arith.constant 0.000000e+00 : f32
    %52 = vector.broadcast %cst_24 : f32 to vector<8x1xf32>
    %53 = arith.maximumf %51, %52 : vector<8x1xf32>
    %54 = vector.broadcast %44 : vector<8x1xf32> to vector<8x128xf32>
    %55 = arith.subf %38, %54 : vector<8x128xf32>
    %cst_25 = arith.constant 9.99999974E-6 : f32
    %56 = vector.broadcast %cst_25 : f32 to vector<8x1xf32>
    %57 = arith.addf %53, %56 : vector<8x1xf32>
    %58 = math.rsqrt %57 : vector<8x1xf32>
    %59 = vector.broadcast %58 : vector<8x1xf32> to vector<8x128xf32>
    %60 = arith.mulf %55, %59 : vector<8x128xf32>
    %61 = vector.broadcast %39 : vector<1x128xf32> to vector<8x128xf32>
    %62 = arith.mulf %60, %61 : vector<8x128xf32>
    %63 = vector.broadcast %40 : vector<1x128xf32> to vector<8x128xf32>
    %64 = arith.addf %62, %63 : vector<8x128xf32>
    %cst_26 = arith.constant 0.000000e+00 : f32
    %65 = vector.broadcast %cst_26 : f32 to vector<8x128xf32>
    %66 = arith.maximumf %64, %65 : vector<8x128xf32>
    %c0_27 = arith.constant 0 : index
    %c0_28 = arith.constant 0 : index
    %67 = vector.load %arg4[%c0_27, %c0_28] : memref<128x16xf32, #tpu.memory_space<vmem>>, vector<128x16xf32>
    %cst_29 = arith.constant dense<0.000000e+00> : vector<8x16xf32>
    %68 = tpu.matmul %66, %67, %cst_29 {dimension_numbers = #tpu.dot_dimension_numbers<[1], [0], [0], [1], [0, 0, 1, 1], [], []>} : vector<8x128xf32>, vector<128x16xf32>, vector<8x16xf32> -> vector<8x16xf32>
    %c6 = arith.constant 6 : index
    %c0_30 = arith.constant 0 : index
    %69 = vector.load %arg5[%c6, %c0_30] : memref<7x128xf32, #tpu.memory_space<vmem>>, vector<1x128xf32>
    %70 = vector.extract_strided_slice %69 {offsets = [0, 0], sizes = [1, 16], strides = [1, 1]} : vector<1x128xf32> to vector<1x16xf32>
    %71 = vector.broadcast %70 : vector<1x16xf32> to vector<8x16xf32>
    %72 = arith.addf %68, %71 : vector<8x16xf32>
    %c0_31 = arith.constant 0 : index
    %c0_32 = arith.constant 0 : index
    %73 = vector.load %arg6[%c0_31, %c0_32] : memref<8x16xf32, #tpu.memory_space<vmem>>, vector<8x16xf32>
    tpu.vector_store %arg6[%c0_31, %c0_32], %72 {strides = array<i32>} : memref<8x16xf32, #tpu.memory_space<vmem>>, vector<8x16xf32>,
    return
  }
  func.func @transform_0(%arg0: i32) -> (i32, i32) {
    %c0_i32 = arith.constant 0 : i32
    %c0_i32_0 = arith.constant 0 : i32
    return %arg0, %c0_i32 : i32, i32
  }
  func.func @transform_1(%arg0: i32) -> (i32, i32) {
    %c0_i32 = arith.constant 0 : i32
    %c0_i32_0 = arith.constant 0 : i32
    %c0_i32_1 = arith.constant 0 : i32
    return %c0_i32, %c0_i32_0 : i32, i32
  }
  func.func @transform_2(%arg0: i32) -> (i32, i32) {
    %c0_i32 = arith.constant 0 : i32
    %c0_i32_0 = arith.constant 0 : i32
    %c0_i32_1 = arith.constant 0 : i32
    return %c0_i32, %c0_i32_0 : i32, i32
  }
  func.func @transform_3(%arg0: i32) -> (i32, i32) {
    %c0_i32 = arith.constant 0 : i32
    %c0_i32_0 = arith.constant 0 : i32
    %c0_i32_1 = arith.constant 0 : i32
    return %c0_i32, %c0_i32_0 : i32, i32
  }
  func.func @transform_4(%arg0: i32) -> (i32, i32) {
    %c0_i32 = arith.constant 0 : i32
    %c0_i32_0 = arith.constant 0 : i32
    %c0_i32_1 = arith.constant 0 : i32
    return %c0_i32, %c0_i32_0 : i32, i32
  }
  func.func @transform_5(%arg0: i32) -> (i32, i32) {
    %c0_i32 = arith.constant 0 : i32
    %c0_i32_0 = arith.constant 0 : i32
    return %arg0, %c0_i32 : i32, i32
  }
}

</mosaic_0001>

<bundles_post_ra>
// kernel: tpu_custom_call.1
= control target key start
LH: loop header
LB: loop body
LE: loop exit
PB: predicated region body
PF: predicated region fallthrough
CT: control target
= control target key end

     0   :  { %10 = vsyncpa [#allocation3], 0  ;;  %s798_s0 = inlined_call_operand.hbm [shape: f32[8,16], index: 0, kind: input, shape index: {}]   ;;  %s799_s1 = inlined_call_operand.vmem [shape: f32[16,128], index: 1, kind: input, shape index: {}]   ;;  %s800_s2 = inlined_call_operand.vmem [shape: f32[128,128], index: 2, kind: input, shape index: {}]   ;;  %s801_s3 = inlined_call_operand.vmem [shape: f32[128,16], index: 3, kind: input, shape index: {}]   ;;  %s802_s4 = inlined_call_operand.vmem [shape: f32[7,128], index: 4, kind: input, shape index: {}]   ;;  %s803_s5 = inlined_call_operand.hbm [shape: f32[8,16], index: 5, kind: output, shape index: {}]  }
   0x1   :  { %11 = vsyncpa [#allocation4], 0  ;;  %s597_s18 = smov [#allocation2]   ;;  %s549_s22 = scalar_lea.hbm %s798_s0, 128 }
   0x2   :  { %s18_s19 = sshll.u32 %s597_s18, 4  ;;  %p550_p0 = scmp.ne.s32.totalorder %s798_s0, %s549_s22  ;;  %s19_s19 = int_to_ptr.vmem [resolvable:$true] %s18_s19 }
   0x3   :  { %p553_p1 = scmp.lt.u32.totalorder %s549_s22, %s798_s0 }
   0x5   :  { %p555_p2 = pnand %p553_p1, %p550_p0 }
   0x7   :  { %558 = shalt.err (!%p555_p2)
}
   0x8   :  { %s559_s27 = scalar_lea.vmem %s19_s19, 128  ;;  %p564_p4 = scmp.lt.s32.totalorder %s19_s19, %s19_s19 }
   0x9   :  { %p560_p3 = scmp.ne.s32.totalorder %s19_s19, %s559_s27  ;;  %p565_p5 = scmp.lt.s32.totalorder %s559_s27, %s559_s27 }
   0xb   :  { %p566_p6 = por %p565_p5, %p564_p4 }
   0xd   :  { %p567_p7 = pnand %p566_p6, %p560_p3 }
   0xf   :  { %570 = shalt.err (!%p567_p7)
}
  0x10   :  { %21 = dma.hbm_to_vmem [thread:$0]  %s798_s0, 128, %s19_s19, [#allocation3]  }
  0x11   :  { %593 = dma.done.wait [#allocation3], 128  }
  0x12   :  { %594 = vsyncadd [#allocation3], 4294967168  ;;  %v598_v0 = vmov 0.0|0.0   ;;  %vm599_vm0 = vmmov 0   ;;  %v600_v1 = vmov 0.0   ;;  %v34_v2 = vld [vmem:[%s799_s1] sm:$0xff] }
  0x13   :  { %489 = vmatprep.subr.bf16.mxu0 %v598_v0  ;;  %416 = vmatprep.mubr.msk.f32.mxu0 %vm599_vm0, %v600_v1  ;;  %v35_v3 = vld [vmem:[%s799_s1 + $0x8] sm:$0xff]  ;;  %v33_v5 = vld [vmem:[#allocation2] sm:$0xff]  ;;  %vm41_vm1 = vcmask 130048   ;;  %v144_v14 = vld [vmem:[%s800_s2 + $0x10] sm:$0xff]  ;;  %s601_s28 = smov [#allocation5]  }
  0x14   :  { %492 = vmatprep.subr.bf16.mxu1 %v598_v0  ;;  %451 = vmatprep.mubr.msk.f32.mxu1 %vm599_vm0, %v600_v1  ;;  %v490_v4 = vpack.c.bf16 %v35_v3, %v34_v2  ;;  %v367_v6 = vld [vmem:[%s802_s4] ss:$0 sm:$0xff]  ;;  %v143_v12 = vld [vmem:[%s800_s2 + $0x8] sm:$0xff]  ;;  %v145_v15 = vld [vmem:[%s800_s2 + $0x18] sm:$0xff]  ;;  %s358_s29 = sshll.u32 %s601_s28, 4  ;;  %s359_s29 = int_to_ptr.vmem [resolvable:$true] %s358_s29 }
  0x15   :  { %v142_v11 = vld [vmem:[%s800_s2] sm:$0xff]  ;;  %v496_v16 = vpack.c.bf16 %v145_v15, %v144_v14  ;;  %v147_v18 = vld [vmem:[%s800_s2 + $0x28] sm:$0xff]  ;;  %v148_v20 = vld [vmem:[%s800_s2 + $0x30] sm:$0xff]  ;;  %s571_s30 = scalar_lea.vmem %s359_s29, 128  ;;  %p576_p9 = scmp.lt.s32.totalorder %s359_s29, %s359_s29 }
  0x16   :  { %491 = vmatpush3.bf16.msra.mxu0 %v490_v4  ;;  %v493_v13 = vpack.c.bf16 %v143_v12, %v142_v11  ;;  %v146_v17 = vld [vmem:[%s800_s2 + $0x20] sm:$0xff]  ;;  %v149_v21 = vld [vmem:[%s800_s2 + $0x38] sm:$0xff]  ;;  %v151_v24 = vld [vmem:[%s800_s2 + $0x48] sm:$0xff]  ;;  %p572_p8 = scmp.ne.s32.totalorder %s359_s29, %s571_s30  ;;  %p577_p10 = scmp.lt.s32.totalorder %s571_s30, %s571_s30 }
  0x17   :  { %516 = vmatprep.subr.bf16.mxu0 %v598_v0  ;;  %v499_v19 = vpack.c.bf16 %v147_v18, %v146_v17  ;;  %v502_v22 = vpack.c.bf16 %v149_v21, %v148_v20  ;;  %v150_v23 = vld [vmem:[%s800_s2 + $0x40] sm:$0xff]  ;;  %v152_v26 = vld [vmem:[%s800_s2 + $0x50] sm:$0xff]  ;;  %v153_v27 = vld [vmem:[%s800_s2 + $0x58] sm:$0xff] }
  0x18   :  { %494 = vmatpush3.bf16.msra.mxu1 %v493_v13  ;;  %v505_v25 = vpack.c.bf16 %v151_v24, %v150_v23  ;;  %v508_v28 = vpack.c.bf16 %v153_v27, %v152_v26  ;;  %v154_v29 = vld [vmem:[%s800_s2 + $0x60] sm:$0xff]  ;;  %v155_v30 = vld [vmem:[%s800_s2 + $0x68] sm:$0xff]  ;;  %v156_v32 = vld [vmem:[%s800_s2 + $0x70] sm:$0xff]  ;;  %p578_p11 = por %p577_p10, %p576_p9 }
  0x19   :  { %417 = vmatmul.mubr.msk.f32.vlgmr.msra.gmra.mrb[0].mxu0 %vm41_vm1, %v33_v5  ;;  %495 = vmatprep.subr.bf16.mxu1 %v598_v0  ;;  %v511_v31 = vpack.c.bf16 %v155_v30, %v154_v29  ;;  %v157_v33 = vld [vmem:[%s800_s2 + $0x78] sm:$0xff]  ;;  %v369_v45 = vld [vmem:[%s802_s4 + $0x1] ss:$0 sm:$0xff]  ;;  %v370_v47 = vld [vmem:[%s802_s4 + $0x2] ss:$0 sm:$0xff] }
  0x1a   :  { %486 = vmatprep.mubr.msk.f32.mxu0 %vm599_vm0, %v600_v1  ;;  %v514_v34 = vpack.c.bf16 %v157_v33, %v156_v32  ;;  %v371_v51 = vld [vmem:[%s802_s4 + $0x3] ss:$0 sm:$0xff]  ;;  %v261_v57 = vld [vmem:[%s801_s3 + $0x8] sm:$0xff]  ;;  %v262_v59 = vld [vmem:[%s801_s3 + $0x10] sm:$0xff]  ;;  %p579_p12 = pnand %p578_p11, %p572_p8 }
  0x1b   :  { %v260_v56 = vld [vmem:[%s801_s3] sm:$0xff]  ;;  %v263_v60 = vld [vmem:[%s801_s3 + $0x18] sm:$0xff]  ;;  %v265_v63 = vld [vmem:[%s801_s3 + $0x28] sm:$0xff] }
  0x1c   :  { %497 = vmatpush3.bf16.msra.mxu1 %v496_v16  ;;  %v517_v58 = vpack.c.bf16 %v261_v57, %v260_v56  ;;  %v520_v61 = vpack.c.bf16 %v263_v60, %v262_v59  ;;  %v264_v62 = vld [vmem:[%s801_s3 + $0x20] sm:$0xff]  ;;  %v266_v2 = vld [vmem:[%s801_s3 + $0x30] sm:$0xff]  ;;  %v267_v3 = vld [vmem:[%s801_s3 + $0x38] sm:$0xff] }
  0x1d   :  { %498 = vmatprep.subr.bf16.mxu1 %v598_v0  ;;  %v523_v1 = vpack.c.bf16 %v265_v63, %v264_v62  ;;  %v526_v4 = vpack.c.bf16 %v267_v3, %v266_v2  ;;  %v268_v5 = vld [vmem:[%s801_s3 + $0x40] sm:$0xff]  ;;  %v273_v12 = vld [vmem:[%s801_s3 + $0x68] sm:$0xff]  ;;  %v274_v14 = vld [vmem:[%s801_s3 + $0x70] sm:$0xff] }
  0x1e   :  { %518 = vmatpush3.bf16.msra.mxu0 %v517_v58  ;;  %v272_v11 = vld [vmem:[%s801_s3 + $0x60] sm:$0xff]  ;;  %v275_v15 = vld [vmem:[%s801_s3 + $0x78] sm:$0xff] }
  0x1f   :  { %519 = vmatprep.subr.bf16.mxu0 %v598_v0  ;;  %v535_v13 = vpack.c.bf16 %v273_v12, %v272_v11  ;;  %v538_v16 = vpack.c.bf16 %v275_v15, %v274_v14  ;;  %v372_v27 = vld [vmem:[%s802_s4 + $0x4] ss:$0 sm:$0xff]  ;;  %v374_v32 = vld [vmem:[%s802_s4 + $0x6] ss:$0 sm:$0xff] }
  0x20   :  { %500 = vmatpush3.bf16.msra.mxu1 %v499_v19 }
  0x21   :  { %501 = vmatprep.subr.bf16.mxu1 %v598_v0 }
  0x22   :  { %521 = vmatpush3.bf16.msra.mxu0 %v520_v61 }
  0x23   :  { %522 = vmatprep.subr.bf16.mxu0 %v598_v0 }
  0x24   :  { %503 = vmatpush3.bf16.msra.mxu1 %v502_v22 }
  0x25   :  { %504 = vmatprep.subr.bf16.mxu1 %v598_v0 }
  0x26   :  { %524 = vmatpush3.bf16.msra.mxu0 %v523_v1 }
  0x27   :  { %525 = vmatprep.subr.bf16.mxu0 %v598_v0 }
  0x28   :  { %506 = vmatpush3.bf16.msra.mxu1 %v505_v25 }
  0x29   :  { %507 = vmatprep.subr.bf16.mxu1 %v598_v0 }
  0x2a   :  { %527 = vmatpush3.bf16.msra.mxu0 %v526_v4 }
  0x2b   :  { %528 = vmatprep.subr.bf16.mxu0 %v598_v0 }
  0x2c   :  { %509 = vmatpush3.bf16.msra.mxu1 %v508_v28 }
  0x2d   :  { %510 = vmatprep.subr.bf16.mxu1 %v598_v0 }
  0x30   :  { %512 = vmatpush3.bf16.msra.mxu1 %v511_v31 }
  0x31   :  { %513 = vmatprep.subr.bf16.mxu1 %v598_v0 }
  0x34   :  { %515 = vmatpush3.bf16.msra.mxu1 %v514_v34 }
  0xec   :  { %v111_v7 = vpop.f32.mrb[0].mxu0 }
  0xed   :  { %v112_v8 = vadd.f32 %v367_v6, %v111_v7  ;;  %v418_v9 = vpop.f32.mrb[1].mxu0  ;;  %v269_v6 = vld [vmem:[%s801_s3 + $0x48] sm:$0xff] }
  0xee   :  { %v529_v7 = vpack.c.bf16 %v269_v6, %v268_v5  ;;  %v271_v9 = vld [vmem:[%s801_s3 + $0x58] sm:$0xff] }
  0xef   :  { %117 = vadd.xlane.f32.xlu0 %v112_v8  ;;  %v120_v10 = vmul.f32 %v112_v8, %v112_v8 }
  0xf0   :  { %530 = vmatpush3.bf16.msra.mxu0 %v529_v7 }
  0xf1   :  { %531 = vmatprep.subr.bf16.mxu0 %v598_v0 }
  0xf3   :  { %121 = vadd.xlane.f32.xlu0 %v120_v10 }
 0x17c   :  { %v118_v35 = vpop.xlane.xlu0 %117 }
 0x17d   :  { %v119_v36 = vmul.f32 0.03125, %v118_v35 }
 0x17f   :  { %v124_v38 = vmul.f32 %v119_v36, %v119_v36  ;;  %v127_v43 = vsub.f32 %v112_v8, %v119_v36  ;;  %v270_v8 = vld [vmem:[%s801_s3 + $0x50] sm:$0xff] }
 0x180   :  { %v122_v37 = vpop.xlane.xlu0 %121  ;;  %v532_v10 = vpack.c.bf16 %v271_v9, %v270_v8 }
 0x181   :  { %v123_v39 = vmul.f32 0.03125, %v122_v37 }
 0x182   :  { %533 = vmatpush3.bf16.msra.mxu0 %v532_v10 }
 0x183   :  { %v125_v40 = vsub.f32 %v123_v39, %v124_v38  ;;  %534 = vmatprep.subr.bf16.mxu0 %v598_v0 }
 0x185   :  { %v126_v41 = vmax.f32 %v125_v40, 0.0 }
 0x186   :  { %536 = vmatpush3.bf16.msra.mxu0 %v535_v13 }
 0x187   :  { %v128_v42 = vadd.f32 1e-05, %v126_v41  ;;  %537 = vmatprep.subr.bf16.mxu0 %v598_v0  ;;  %v373_v0 = vld [vmem:[%s802_s4 + $0x5] ss:$0 sm:$0xff] }
 0x189   :  { %545 = vrsqrt.f32 %v128_v42 }
 0x18a   :  { %539 = vmatpush3.bf16.msra.mxu0 %v538_v16 }
 0x193   :  { %v546_v44 = vpop.eup %545 }
 0x194   :  { %v130_v46 = vmul.f32 %v546_v44, %v127_v43 }
 0x196   :  { %v135_v48 = vmul.f32 %v369_v45, %v130_v46 }
 0x198   :  { %v140_v49 = vadd.f32 %v370_v47, %v135_v48 }
 0x19a   :  { %v141_v50 = vmax.f32 %v140_v49, 0.0 }
 0x19c   :  { %452 = vmatmul.mubr.f32.vlgmr.msra.gmra.mrb[0].mxu1 %v141_v50 }
 0x26f   :  { %v229_v52 = vpop.f32.mrb[0].mxu1 }
 0x270   :  { %v230_v53 = vadd.f32 %v371_v51, %v229_v52  ;;  %v453_v54 = vpop.f32.mrb[1].mxu1 }
 0x272   :  { %235 = vadd.xlane.f32.xlu1 %v230_v53  ;;  %v238_v55 = vmul.f32 %v230_v53, %v230_v53 }
 0x276   :  { %239 = vadd.xlane.f32.xlu1 %v238_v55 }
 0x2ff   :  { %v236_v17 = vpop.xlane.xlu1 %235 }
 0x300   :  { %v237_v18 = vmul.f32 0.03125, %v236_v17 }
 0x302   :  { %v242_v20 = vmul.f32 %v237_v18, %v237_v18  ;;  %v245_v25 = vsub.f32 %v230_v53, %v237_v18 }
 0x303   :  { %v240_v19 = vpop.xlane.xlu1 %239 }
 0x304   :  { %v241_v21 = vmul.f32 0.03125, %v240_v19 }
 0x306   :  { %v243_v22 = vsub.f32 %v241_v21, %v242_v20 }
 0x308   :  { %v244_v23 = vmax.f32 %v243_v22, 0.0 }
 0x30a   :  { %v246_v24 = vadd.f32 1e-05, %v244_v23 }
 0x30c   :  { %547 = vrsqrt.f32 %v246_v24 }
 0x316   :  { %v548_v26 = vpop.eup %547 }
 0x317   :  { %v248_v28 = vmul.f32 %v548_v26, %v245_v25 }
 0x319   :  { %v253_v29 = vmul.f32 %v372_v27, %v248_v28 }
 0x31b   :  { %v258_v30 = vadd.f32 %v373_v0, %v253_v29 }
 0x31d   :  { %v259_v31 = vmax.f32 %v258_v30, 0.0 }
 0x31f   :  { %487 = vmatmul.mubr.f32.vlgmr.msra.gmra.mrb[2].mxu0 %v259_v31 }
 0x3f2   :  { %v347_v33 = vpop.f32.mrb[2].mxu0 }
 0x3f3   :  { %v348_v34 = vadd.f32 %v374_v32, %v347_v33  ;;  %v488_v35 = vpop.f32.mrb[3].mxu0 }
 0x3f5   :  { %351 = vst.msk [vmem:[#allocation5] sm:$0xff] %vm41_vm1, %v348_v34 }
 0x3f6   :  { %582 = shalt.err (!%p579_p12)
}
 0x3f7   :  { %s583_s8 = scalar_lea.hbm %s803_s5, 128 }
 0x3f8   :  { %p584_p13 = scmp.ne.s32.totalorder %s803_s5, %s583_s8  ;;  %p587_p0 = scmp.lt.u32.totalorder %s583_s8, %s803_s5 }
 0x3fa   :  { %p589_p1 = pnand %p587_p0, %p584_p13 }
 0x3fc   :  { %592 = shalt.err (!%p589_p1)
}
 0x3fd   :  { %361 = dma.vmem_to_hbm [thread:$0]  %s359_s29, 128, %s803_s5, [#allocation4]  }
 0x3fe   :  { %595 = dma.done.wait [#allocation4], 128  }
 0x3ff   :  { %596 = vsyncadd [#allocation4], 4294967168 }
 0x400   :  { %365 = vsyncpa [#allocation3], 1 }
 0x401   :  { %366 = vsyncpa [#allocation4], 1 }

</bundles_post_ra>
